<compile_context>
chip_gen: v6e
topology: v6e:2x2x1
jax: 0.10.0
libtpu: 0.0.40
codegen_flags: <defaults>
</compile_context>

<pallas_src>
import functools

import jax
import jax.numpy as jnp
from jax.experimental import pallas as pl
from jax.experimental.pallas import tpu as pltpu


def cbn_kernel(x_ref, gam_ref, bet_ref, rmean_ref, rvar_ref,
               out_ref, rmean_out_ref, rvar_out_ref,
               *, eps, eaf, count, hw_real, hw_pad):
    x = x_ref[...]                                                   # (N, Cb, HWp)
    padded = hw_real != hw_pad

    if padded:
        lane = jax.lax.broadcasted_iota(jnp.int32, x.shape, 2)
        mask = (lane < hw_real).astype(jnp.float32)
        x_valid = x * mask
    else:
        x_valid = x

    # ---- per-channel mean: reduce over N first (VPU), then one XLU reduce over HW ----
    s = jnp.sum(jnp.sum(x_valid, axis=0, keepdims=True), axis=2, keepdims=True)  # (1,Cb,1)
    mean = s / count                                                  # (1, Cb, 1)

    # ---- two-pass variance (block is VMEM-resident, extra pass is free VPU work) ----
    diff = x - mean
    if padded:
        diff = diff * mask
    sq = jnp.sum(jnp.sum(diff * diff, axis=0, keepdims=True), axis=2, keepdims=True)
    var = sq / max(count - 1.0, 1.0)                                  # unbiased (torch .var())
    inv = jax.lax.rsqrt(var + eps)                                    # (1, Cb, 1)

    # ---- fold gamma/beta into a single scale/shift per (N, C) ----
    scale = gam_ref[...] * inv                                        # (N, Cb, 1)
    shift = bet_ref[...] - mean * scale                               # (N, Cb, 1)
    out_ref[...] = x * scale + shift                                  # 2 VPU ops / element

    # ---- running statistics update (training branch, momentum != None) ----
    rmean_out_ref[...] = rmean_ref[...] * (1.0 - eaf) + mean * eaf
    rvar_out_ref[...] = rvar_ref[...] * (1.0 - eaf) + var * eaf


def _vmem_budget():
    """(scoped vmem cap, per-block byte budget), generation-aware via get_tpu_info."""
    phys = 64 * 1024 * 1024                       # conservative fallback (v7x per-TC VMEM)
    try:
        info = pltpu.get_tpu_info()
        phys = int(getattr(info, "vmem_capacity_bytes", phys))
    except Exception:
        pass
    cap = (phys * 3) // 4                         # 48 MiB on v7x, 96 MiB on v5e/v6e
    blk_budget = max(2 * 1024 * 1024,
                     min(16 * 1024 * 1024, (cap - (2 << 20)) // 6))
    return int(cap), int(blk_budget)


def _pick_c_block(N, C, HW_pad, *, budget_bytes):
    """Channel tile: multiple of 8, divides C, fits budget, >=2 grid steps when possible."""
    if C % 8 != 0:
        return C                                  # small / odd C -> single full-C block
    per_chan_bytes = N * HW_pad * 4
    max_c = max(8, (budget_bytes // max(per_chan_bytes, 1)) // 8 * 8)
    if C >= 16:
        # cap at ~C/2 so the grid has >=2 steps (megacore + DMA pipelining engage)
        max_c = min(max_c, max(8, (C // 2) // 8 * 8))
    c_blk = min(C, max_c)
    while c_blk > 8 and C % c_blk != 0:
        c_blk -= 8
    return c_blk


def cbn_forward(x, onehot, params, *, eps=1e-5, momentum=0.9):
    """x: (N, C, H, W) f32, onehot: (N, n_category) f32.  Training path."""
    N, C, H, W = x.shape
    HW = H * W
    HW_pad = ((HW + 127) // 128) * 128            # lane-dense last dim (dense vst)
    x3 = x.reshape(N, C, HW).astype(jnp.float32)
    if HW_pad != HW:
        x3 = jnp.pad(x3, ((0, 0), (0, 0), (0, HW_pad - HW)))

    # --- conditioning MLPs hoisted out of the kernel (tiny; plain XLA) ---
    hg = jnp.maximum(onehot @ params["w1g"] + params["b1g"], 0.0)
    d_gamma = hg @ params["w2g"] + params["b2g"]                     # (N, C)
    hb = jnp.maximum(onehot @ params["w1b"] + params["b1b"], 0.0)
    d_beta = hb @ params["w2b"] + params["b2b"]                      # (N, C)
    gammas = (params["gamma"] + d_gamma).reshape(N, C, 1).astype(jnp.float32)
    betas = (params["beta"] + d_beta).reshape(N, C, 1).astype(jnp.float32)
    rmean = params["running_mean"].reshape(1, C, 1).astype(jnp.float32)
    rvar = params["running_var"].reshape(1, C, 1).astype(jnp.float32)

    # TODO(synk): num_batches_tracked counter (only relevant when momentum is
    # None) and the is_training=False branch (normalize with running stats)
    # are not modeled.
    eaf = 1.0 - momentum                                             # training, momentum != None

    vmem_cap, blk_budget = _vmem_budget()
    c_blk = _pick_c_block(N, C, HW_pad, budget_bytes=blk_budget)
    grid = (C // c_blk,)
    block_bytes = N * c_blk * HW_pad * 4
    vmem_limit = int(max(8 * 1024 * 1024,
                         min(vmem_cap, 6 * block_bytes + (2 << 20))))

    kern = functools.partial(cbn_kernel, eps=eps, eaf=eaf,
                             count=float(N * HW), hw_real=HW, hw_pad=HW_pad)
    out3, new_rm, new_rv = pl.pallas_call(
        kern,
        grid=grid,
        in_specs=[
            pl.BlockSpec((N, c_blk, HW_pad), lambda c: (0, c, 0)),   # x
            pl.BlockSpec((N, c_blk, 1), lambda c: (0, c, 0)),        # gammas
            pl.BlockSpec((N, c_blk, 1), lambda c: (0, c, 0)),        # betas
            pl.BlockSpec((1, c_blk, 1), lambda c: (0, c, 0)),        # running_mean
            pl.BlockSpec((1, c_blk, 1), lambda c: (0, c, 0)),        # running_var
        ],
        out_specs=(
            pl.BlockSpec((N, c_blk, HW_pad), lambda c: (0, c, 0)),
            pl.BlockSpec((1, c_blk, 1), lambda c: (0, c, 0)),
            pl.BlockSpec((1, c_blk, 1), lambda c: (0, c, 0)),
        ),
        out_shape=(
            jax.ShapeDtypeStruct((N, C, HW_pad), jnp.float32),
            jax.ShapeDtypeStruct((1, C, 1), jnp.float32),
            jax.ShapeDtypeStruct((1, C, 1), jnp.float32),
        ),
        compiler_params=pltpu.CompilerParams(
            dimension_semantics=("parallel",),
            vmem_limit_bytes=vmem_limit,
        ),
        cost_estimate=pl.CostEstimate(
            flops=7 * N * C * HW_pad,
            transcendentals=C,
            bytes_accessed=2 * N * C * HW_pad * 4 + 3 * N * C * 4 + 4 * C * 4,
        ),
    )(x3, gammas, betas, rmean, rvar)

    if HW_pad != HW:
        out3 = out3[:, :, :HW]
    return out3.reshape(N, C, H, W), new_rm[0, :, 0], new_rv[0, :, 0]


def init_params(key, n_category, n_hidden, num_features):
    """Deterministic parameter init mirroring CBN.__init__ shapes."""
    ks = jax.random.split(key, 5)

    def xavier(k, fan_in, fan_out):
        bound = (6.0 / (fan_in + fan_out)) ** 0.5
        # stored transposed vs torch Linear: (in, out) for x @ W
        return jax.random.uniform(k, (fan_in, fan_out), jnp.float32, -bound, bound)

    return {
        "w1g": xavier(ks[0], n_category, n_hidden),
        "b1g": jnp.full((1, n_hidden), 0.1, jnp.float32),
        "w2g": xavier(ks[1], n_hidden, num_features),
        "b2g": jnp.full((1, num_features), 0.1, jnp.float32),
        "w1b": xavier(ks[2], n_category, n_hidden),
        "b1b": jnp.full((1, n_hidden), 0.1, jnp.float32),
        "w2b": xavier(ks[3], n_hidden, num_features),
        "b2b": jnp.full((1, num_features), 0.1, jnp.float32),
        "gamma": jax.random.uniform(ks[4], (1, num_features), jnp.float32),  # uniform_()
        "beta": jnp.zeros((1, num_features), jnp.float32),
        "running_mean": jnp.zeros((1, num_features), jnp.float32),
        "running_var": jnp.ones((1, num_features), jnp.float32),
    }


def cbn_reference(x, onehot, params, *, eps=1e-5, momentum=0.9):
    """Pure-JAX reference matching the PyTorch forward (training path)."""
    N, C, H, W = x.shape
    hg = jnp.maximum(onehot @ params["w1g"] + params["b1g"], 0.0)
    d_gamma = hg @ params["w2g"] + params["b2g"]
    hb = jnp.maximum(onehot @ params["w1b"] + params["b1b"], 0.0)
    d_beta = hb @ params["w2b"] + params["b2b"]
    gammas = params["gamma"] + d_gamma
    betas = params["beta"] + d_beta
    xc = jnp.transpose(x, (1, 0, 2, 3)).reshape(C, -1)
    mean = xc.mean(axis=1)
    var = xc.var(axis=1, ddof=1)  # torch .var() default: unbiased
    xhat = (x - mean[None, :, None, None]) / jnp.sqrt(var[None, :, None, None] + eps)
    out = gammas[:, :, None, None] * xhat + betas[:, :, None, None]
    eaf = 1.0 - momentum
    rm = params["running_mean"][0] * (1.0 - eaf) + mean * eaf
    rv = params["running_var"][0] * (1.0 - eaf) + var * eaf
    return out, rm, rv


if __name__ == "__main__":
    key = jax.random.PRNGKey(0)
    kx, kp = jax.random.split(key)

    N, C, H, W = 2, 4, 16, 16
    n_category, n_hidden = 8, 32

    x = jax.random.normal(kx, (N, C, H, W), jnp.float32)
    labels = jnp.array([1, 5], jnp.int32)
    onehot = jax.nn.one_hot(labels, n_category, dtype=jnp.float32)
    params = init_params(kp, n_category, n_hidden, C)

    out, rm, rv = cbn_forward(x, onehot, params, eps=1e-5, momentum=0.9)
    jax.block_until_ready(out)

    ref_out, ref_rm, ref_rv = cbn_reference(x, onehot, params, eps=1e-5, momentum=0.9)
    assert jnp.allclose(out, ref_out, atol=1e-4, rtol=1e-4)
    assert jnp.allclose(rm, ref_rm, atol=1e-5, rtol=1e-5)
    assert jnp.allclose(rv, ref_rv, atol=1e-4, rtol=1e-4)

    print("KERNEL_OK")
</pallas_src>

<mosaic_0001>
module attributes {stable_mosaic.version = 11 : i64} {
  func.func @cbn_kernel(%arg0: i32, %arg1: memref<2x4x256xf32, #tpu.memory_space<vmem>>, %arg2: memref<2x4x1xf32, #tpu.memory_space<vmem>>, %arg3: memref<2x4x1xf32, #tpu.memory_space<vmem>>, %arg4: memref<1x4x1xf32, #tpu.memory_space<vmem>>, %arg5: memref<1x4x1xf32, #tpu.memory_space<vmem>>, %arg6: memref<2x4x256xf32, #tpu.memory_space<vmem>>, %arg7: memref<1x4x1xf32, #tpu.memory_space<vmem>>, %arg8: memref<1x4x1xf32, #tpu.memory_space<vmem>>) attributes {dimension_semantics = [#tpu.dimension_semantics<parallel>], iteration_bounds = array<i64: 1>, scalar_prefetch = 0 : i64, scratch_operands = 0 : i64, tpu.core_type = #tpu.core_type<tc>, window_params = [{transform_indices = @transform_0, window_bounds = array<i64: 2, 4, 256>}, {transform_indices = @transform_1, window_bounds = array<i64: 2, 4, 1>}, {transform_indices = @transform_2, window_bounds = array<i64: 2, 4, 1>}, {transform_indices = @transform_3, window_bounds = array<i64: 1, 4, 1>}, {transform_indices = @transform_4, window_bounds = array<i64: 1, 4, 1>}, {transform_indices = @transform_5, window_bounds = array<i64: 2, 4, 256>}, {transform_indices = @transform_6, window_bounds = array<i64: 1, 4, 1>}, {transform_indices = @transform_7, window_bounds = array<i64: 1, 4, 1>}]} {
    %c0 = arith.constant 0 : index
    %c0_0 = arith.constant 0 : index
    %c0_1 = arith.constant 0 : index
    %0 = vector.load %arg1[%c0, %c0_0, %c0_1] : memref<2x4x256xf32, #tpu.memory_space<vmem>>, vector<2x4x256xf32>
    %cst = arith.constant dense<0.000000e+00> : vector<4x256xf32>
    %1 = vector.multi_reduction <add>, %0, %cst [0] : vector<2x4x256xf32> to vector<4x256xf32>
    %2 = vector.shape_cast %1 : vector<4x256xf32> to vector<1x4x256xf32>
    %cst_2 = arith.constant dense<0.000000e+00> : vector<1x4xf32>
    %3 = vector.multi_reduction <add>, %2, %cst_2 [2] : vector<1x4x256xf32> to vector<1x4xf32>
    %4 = vector.shape_cast %3 : vector<1x4xf32> to vector<1x4x1xf32>
    %cst_3 = arith.constant 5.120000e+02 : f32
    %5 = vector.broadcast %cst_3 : f32 to vector<1x4x1xf32>
    %6 = arith.divf %4, %5 : vector<1x4x1xf32>
    %7 = vector.broadcast %6 : vector<1x4x1xf32> to vector<2x4x256xf32>
    %8 = arith.subf %0, %7 : vector<2x4x256xf32>
    %9 = arith.mulf %8, %8 : vector<2x4x256xf32>
    %cst_4 = arith.constant dense<0.000000e+00> : vector<4x256xf32>
    %10 = vector.multi_reduction <add>, %9, %cst_4 [0] : vector<2x4x256xf32> to vector<4x256xf32>
    %11 = vector.shape_cast %10 : vector<4x256xf32> to vector<1x4x256xf32>
    %cst_5 = arith.constant dense<0.000000e+00> : vector<1x4xf32>
    %12 = vector.multi_reduction <add>, %11, %cst_5 [2] : vector<1x4x256xf32> to vector<1x4xf32>
    %13 = vector.shape_cast %12 : vector<1x4xf32> to vector<1x4x1xf32>
    %cst_6 = arith.constant 5.110000e+02 : f32
    %14 = vector.broadcast %cst_6 : f32 to vector<1x4x1xf32>
    %15 = arith.divf %13, %14 : vector<1x4x1xf32>
    %cst_7 = arith.constant 9.99999974E-6 : f32
    %16 = vector.broadcast %cst_7 : f32 to vector<1x4x1xf32>
    %17 = arith.addf %15, %16 : vector<1x4x1xf32>
    %18 = math.rsqrt %17 : vector<1x4x1xf32>
    %c0_8 = arith.constant 0 : index
    %c0_9 = arith.constant 0 : index
    %c0_10 = arith.constant 0 : index
    %19 = vector.load %arg2[%c0_8, %c0_9, %c0_10] : memref<2x4x1xf32, #tpu.memory_space<vmem>>, vector<2x4x1xf32>
    %20 = vector.broadcast %18 : vector<1x4x1xf32> to vector<2x4x1xf32>
    %21 = arith.mulf %19, %20 : vector<2x4x1xf32>
    %c0_11 = arith.constant 0 : index
    %c0_12 = arith.constant 0 : index
    %c0_13 = arith.constant 0 : index
    %22 = vector.load %arg3[%c0_11, %c0_12, %c0_13] : memref<2x4x1xf32, #tpu.memory_space<vmem>>, vector<2x4x1xf32>
    %23 = vector.broadcast %6 : vector<1x4x1xf32> to vector<2x4x1xf32>
    %24 = arith.mulf %23, %21 : vector<2x4x1xf32>
    %25 = arith.subf %22, %24 : vector<2x4x1xf32>
    %26 = vector.broadcast %21 : vector<2x4x1xf32> to vector<2x4x256xf32>
    %27 = arith.mulf %0, %26 : vector<2x4x256xf32>
    %28 = vector.broadcast %25 : vector<2x4x1xf32> to vector<2x4x256xf32>
    %29 = arith.addf %27, %28 : vector<2x4x256xf32>
    %c0_14 = arith.constant 0 : index
    %c0_15 = arith.constant 0 : index
    %c0_16 = arith.constant 0 : index
    %30 = vector.load %arg6[%c0_14, %c0_15, %c0_16] : memref<2x4x256xf32, #tpu.memory_space<vmem>>, vector<2x4x256xf32>
    tpu.vector_store %arg6[%c0_14, %c0_15, %c0_16], %29 {strides = array<i32>} : memref<2x4x256xf32, #tpu.memory_space<vmem>>, vector<2x4x256xf32>,
    %c0_17 = arith.constant 0 : index
    %c0_18 = arith.constant 0 : index
    %c0_19 = arith.constant 0 : index
    %31 = vector.load %arg4[%c0_17, %c0_18, %c0_19] : memref<1x4x1xf32, #tpu.memory_space<vmem>>, vector<1x4x1xf32>
    %cst_20 = arith.constant 0.899999976 : f32
    %32 = vector.broadcast %cst_20 : f32 to vector<1x4x1xf32>
    %33 = arith.mulf %31, %32 : vector<1x4x1xf32>
    %cst_21 = arith.constant 1.000000e-01 : f32
    %34 = vector.broadcast %cst_21 : f32 to vector<1x4x1xf32>
    %35 = arith.mulf %6, %34 : vector<1x4x1xf32>
    %36 = arith.addf %33, %35 : vector<1x4x1xf32>
    %c0_22 = arith.constant 0 : index
    %c0_23 = arith.constant 0 : index
    %c0_24 = arith.constant 0 : index
    %37 = vector.load %arg7[%c0_22, %c0_23, %c0_24] : memref<1x4x1xf32, #tpu.memory_space<vmem>>, vector<1x4x1xf32>
    tpu.vector_store %arg7[%c0_22, %c0_23, %c0_24], %36 {strides = array<i32>} : memref<1x4x1xf32, #tpu.memory_space<vmem>>, vector<1x4x1xf32>,
    %c0_25 = arith.constant 0 : index
    %c0_26 = arith.constant 0 : index
    %c0_27 = arith.constant 0 : index
    %38 = vector.load %arg5[%c0_25, %c0_26, %c0_27] : memref<1x4x1xf32, #tpu.memory_space<vmem>>, vector<1x4x1xf32>
    %cst_28 = arith.constant 0.899999976 : f32
    %39 = vector.broadcast %cst_28 : f32 to vector<1x4x1xf32>
    %40 = arith.mulf %38, %39 : vector<1x4x1xf32>
    %cst_29 = arith.constant 1.000000e-01 : f32
    %41 = vector.broadcast %cst_29 : f32 to vector<1x4x1xf32>
    %42 = arith.mulf %15, %41 : vector<1x4x1xf32>
    %43 = arith.addf %40, %42 : vector<1x4x1xf32>
    %c0_30 = arith.constant 0 : index
    %c0_31 = arith.constant 0 : index
    %c0_32 = arith.constant 0 : index
    %44 = vector.load %arg8[%c0_30, %c0_31, %c0_32] : memref<1x4x1xf32, #tpu.memory_space<vmem>>, vector<1x4x1xf32>
    tpu.vector_store %arg8[%c0_30, %c0_31, %c0_32], %43 {strides = array<i32>} : memref<1x4x1xf32, #tpu.memory_space<vmem>>, vector<1x4x1xf32>,
    return
  }
  func.func @transform_0(%arg0: i32) -> (i32, i32, i32) {
    %c0_i32 = arith.constant 0 : i32
    %c0_i32_0 = arith.constant 0 : i32
    %c0_i32_1 = arith.constant 0 : i32
    return %c0_i32, %arg0, %c0_i32_0 : i32, i32, i32
  }
  func.func @transform_1(%arg0: i32) -> (i32, i32, i32) {
    %c0_i32 = arith.constant 0 : i32
    %c0_i32_0 = arith.constant 0 : i32
    %c0_i32_1 = arith.constant 0 : i32
    return %c0_i32, %arg0, %c0_i32_0 : i32, i32, i32
  }
  func.func @transform_2(%arg0: i32) -> (i32, i32, i32) {
    %c0_i32 = arith.constant 0 : i32
    %c0_i32_0 = arith.constant 0 : i32
    %c0_i32_1 = arith.constant 0 : i32
    return %c0_i32, %arg0, %c0_i32_0 : i32, i32, i32
  }
  func.func @transform_3(%arg0: i32) -> (i32, i32, i32) {
    %c0_i32 = arith.constant 0 : i32
    %c0_i32_0 = arith.constant 0 : i32
    %c0_i32_1 = arith.constant 0 : i32
    return %c0_i32, %arg0, %c0_i32_0 : i32, i32, i32
  }
  func.func @transform_4(%arg0: i32) -> (i32, i32, i32) {
    %c0_i32 = arith.constant 0 : i32
    %c0_i32_0 = arith.constant 0 : i32
    %c0_i32_1 = arith.constant 0 : i32
    return %c0_i32, %arg0, %c0_i32_0 : i32, i32, i32
  }
  func.func @transform_5(%arg0: i32) -> (i32, i32, i32) {
    %c0_i32 = arith.constant 0 : i32
    %c0_i32_0 = arith.constant 0 : i32
    %c0_i32_1 = arith.constant 0 : i32
    return %c0_i32, %arg0, %c0_i32_0 : i32, i32, i32
  }
  func.func @transform_6(%arg0: i32) -> (i32, i32, i32) {
    %c0_i32 = arith.constant 0 : i32
    %c0_i32_0 = arith.constant 0 : i32
    %c0_i32_1 = arith.constant 0 : i32
    return %c0_i32, %arg0, %c0_i32_0 : i32, i32, i32
  }
  func.func @transform_7(%arg0: i32) -> (i32, i32, i32) {
    %c0_i32 = arith.constant 0 : i32
    %c0_i32_0 = arith.constant 0 : i32
    %c0_i32_1 = arith.constant 0 : i32
    return %c0_i32, %arg0, %c0_i32_0 : i32, i32, i32
  }
}

</mosaic_0001>

<bundles_post_ra>
// kernel: tpu_custom_call.1
= control target key start
LH: loop header
LB: loop body
LE: loop exit
PB: predicated region body
PF: predicated region fallthrough
CT: control target
= control target key end

     0   :  { %vm32_vm0 = vcmask 1043456   ;;  %s325_s0 = inlined_call_operand.vmem [shape: f32[2,4,256], index: 0, kind: input, shape index: {}]   ;;  %s326_s1 = inlined_call_operand.vmem [shape: f32[2,4,1], index: 1, kind: input, shape index: {}]   ;;  %s327_s2 = inlined_call_operand.vmem [shape: f32[2,4,1], index: 2, kind: input, shape index: {}]   ;;  %s328_s3 = inlined_call_operand.vmem [shape: f32[1,4,1], index: 3, kind: input, shape index: {}]   ;;  %s329_s4 = inlined_call_operand.vmem [shape: f32[1,4,1], index: 4, kind: input, shape index: {}]   ;;  %s330_s5 = inlined_call_operand.hbm [shape: f32[2,4,256], index: 5, kind: output, shape index: {0}]   ;;  %s331_s6 = inlined_call_operand.vmem [shape: f32[1,4,1], index: 6, kind: output, shape index: {1}]   ;;  %s332_s7 = inlined_call_operand.vmem [shape: f32[1,4,1], index: 7, kind: output, shape index: {2}]  }
   0x1   :  { %v260_v0 = vld [vmem:[%s325_s0] sm:$0xff]  ;;  %v265_v1 = vld [vmem:[%s325_s0 + $0x8] sm:$0xff] }
   0x2   :  { %v28_v2 = vcombine.high %v260_v0, %v260_v0  ;;  %v29_v3 = vcombine.high %v265_v1, %v265_v1  ;;  %v33_v4 = vsel %vm32_vm0, %v260_v0, 0.0  ;;  %v34_v5 = vsel %vm32_vm0, %v265_v1, 0.0 }
   0x3   :  { %13 = vsyncpa [#allocation3], 0  ;;  %v35_v6 = vadd.f32 %v34_v5, %v33_v4  ;;  %v212_v13 = vmov 839922192   ;;  %v50_v15 = vlaneseq  ;;  %v144_v18 = vld [vmem:[%s328_s3] sm:$0xf] }
   0x4   :  { %v36_v7 = vsel %vm32_vm0, %v28_v2, 0.0  ;;  %v37_v8 = vsel %vm32_vm0, %v29_v3, 0.0  ;;  %v48_v14 = vunpack.c.l.s4 %v212_v13  ;;  %v145_v22 = vmul.f32 0.9, %v144_v18  ;;  %v150_v42 = vld [vmem:[%s329_s4] sm:$0xf] }
   0x5   :  { %v38_v9 = vadd.f32 %v37_v8, %v36_v7  ;;  %v39_v10 = vsel %vm32_vm0, %v35_v6, 0.0  ;;  %v51_v17 = vshrl.u32 %v50_v15, 7  ;;  %vm148_vm1 = vcmask 3072   ;;  %v80_v49 = vld [vmem:[%s326_s1] sm:$0xf] }
   0x6   :  { %v49_v16 = vunpack.c.0.s8 %v48_v14  ;;  %v213_v41 = vmov 0   ;;  %v151_v44 = vmul.f32 0.9, %v150_v42  ;;  %v81_v50 = vld [vmem:[%s326_s1 + $0x4] sm:$0xf]  ;;  %s214_s1 = smov [#allocation2]  }
   0x7   :  { %v40_v11 = vsel %vm32_vm0, %v38_v9, 0.0  ;;  %184 = vset.pattern.permute.xlu1 %v213_v41  ;;  %185 = vset.pattern.permute.xlu0 %v213_v41  ;;  %v84_v54 = vld [vmem:[%s327_s2] sm:$0xf]  ;;  %v85_v58 = vld [vmem:[%s327_s2 + $0x4] sm:$0xf]  ;;  %s160_s16 = sshll.u32 %s214_s1, 4  ;;  %s161_s16 = int_to_ptr.vmem [resolvable:$true] %s160_s16 }
   0x8   :  { %v41_v12 = vadd.f32 %v40_v11, %v39_v10  ;;  %v282_v19 = vsub.s32 %v49_v16, %v51_v17  ;;  %s190_s2 = scalar_lea.vmem %s161_s16, 256  ;;  %p195_p1 = scmp.lt.s32.totalorder %s161_s16, %s161_s16 }
   0x9   :  { %p191_p0 = scmp.ne.s32.totalorder %s161_s16, %s190_s2  ;;  %p196_p2 = scmp.lt.s32.totalorder %s190_s2, %s190_s2 }
   0xa   :  { %42 = vadd.xlane.f32.xlu0 %v41_v12 }
   0xb   :  { %p197_p3 = por %p196_p2, %p195_p1 }
   0xd   :  { %p198_p4 = pnand %p197_p3, %p191_p0 }
  0x93   :  { %v43_v20 = vpop.xlane.xlu0 %42 }
  0x94   :  { %v45_v21 = vmul.f32 0.001953125, %v43_v20 }
  0x96   :  { %v53_v23 = vrot.slane %v45_v21, %v282_v19  ;;  %v146_v24 = vmul.f32 0.1, %v45_v21 }
  0x98   :  { %v55_v25 = vsub.f32 %v260_v0, %v53_v23  ;;  %v56_v26 = vsub.f32 %v265_v1, %v53_v23  ;;  %v147_v27 = vadd.f32 %v146_v24, %v145_v22 }
  0x9a   :  { %v57_v28 = vmul.f32 %v55_v25, %v55_v25  ;;  %v58_v29 = vmul.f32 %v56_v26, %v56_v26  ;;  %149 = vst.msk [vmem:[%s331_s6] sm:$0xf] %vm148_vm1, %v147_v27 }
  0x9c   :  { %v61_v30 = vcombine.high %v57_v28, %v57_v28  ;;  %v62_v31 = vcombine.high %v58_v29, %v58_v29  ;;  %v65_v32 = vsel %vm32_vm0, %v57_v28, 0.0  ;;  %v66_v33 = vsel %vm32_vm0, %v58_v29, 0.0 }
  0x9d   :  { %v67_v34 = vadd.f32 %v66_v33, %v65_v32 }
  0x9e   :  { %v68_v35 = vsel %vm32_vm0, %v61_v30, 0.0  ;;  %v69_v36 = vsel %vm32_vm0, %v62_v31, 0.0 }
  0x9f   :  { %v70_v37 = vadd.f32 %v69_v36, %v68_v35  ;;  %v71_v38 = vsel %vm32_vm0, %v67_v34, 0.0 }
  0xa1   :  { %v72_v39 = vsel %vm32_vm0, %v70_v37, 0.0 }
  0xa2   :  { %v73_v40 = vadd.f32 %v72_v39, %v71_v38 }
  0xa4   :  { %74 = vadd.xlane.f32.xlu0 %v73_v40 }
 0x12d   :  { %v75_v43 = vpop.xlane.xlu0 %74 }
 0x12e   :  { %v77_v45 = vmul.f32 0.0019569471, %v75_v43 }
 0x130   :  { %v78_v46 = vadd.f32 1e-05, %v77_v45  ;;  %v152_v47 = vmul.f32 0.1, %v77_v45 }
 0x132   :  { %188 = vrsqrt.f32 %v78_v46  ;;  %v153_v48 = vadd.f32 %v152_v47, %v151_v44 }
 0x134   :  { %154 = vst.msk [vmem:[%s332_s7] sm:$0xf] %vm148_vm1, %v153_v48 }
 0x13f   :  { %v189_v51 = vpop.eup %188 }
 0x140   :  { %v82_v52 = vmul.f32 %v189_v51, %v80_v49  ;;  %v83_v53 = vmul.f32 %v189_v51, %v81_v50 }
 0x142   :  { %92 = vperm.xlu1 %184, %v82_v52   ;;  %v86_v55 = vmul.f32 %v82_v52, %v45_v21  ;;  %v87_v57 = vmul.f32 %v83_v53, %v45_v21 }
 0x144   :  { %v88_v56 = vsub.f32 %v84_v54, %v86_v55  ;;  %v89_v59 = vsub.f32 %v85_v58, %v87_v57 }
 0x146   :  { %96 = vperm.xlu1 %184, %v83_v53   ;;  %118 = vperm.xlu0 %185, %v88_v56  }
 0x14a   :  { %122 = vperm.xlu1 %184, %v89_v59  }
 0x1bd   :  { %v93_v60 = vpop.permute.xlu1 %92 }
 0x1be   :  { %v104_v61 = vrot.slane %v93_v60, %v282_v19 }
 0x1c0   :  { %v114_v2 = vmul.f32 %v104_v61, %v260_v0 }
 0x1c1   :  { %v97_v62 = vpop.permute.xlu1 %96  ;;  %v119_v63 = vpop.permute.xlu0 %118 }
 0x1c2   :  { %v111_v3 = vrot.slane %v97_v62, %v282_v19  ;;  %v130_v4 = vrot.slane %v119_v63, %v282_v19 }
 0x1c4   :  { %v140_v5 = vadd.f32 %v130_v4, %v114_v2  ;;  %v115_v7 = vmul.f32 %v111_v3, %v265_v1 }
 0x1c5   :  { %v123_v6 = vpop.permute.xlu1 %122 }
 0x1c6   :  { %142 = vst [vmem:[#allocation2] sm:$0xff] %v140_v5  ;;  %v137_v8 = vrot.slane %v123_v6, %v282_v19 }
 0x1c8   :  { %v141_v9 = vadd.f32 %v137_v8, %v115_v7 }
 0x1ca   :  { %143 = vst [vmem:[#allocation2 + $0x8] sm:$0xff] %v141_v9 }
 0x1cb   :  { %201 = shalt.err (!%p198_p4)
}
 0x1cc   :  { %s215_s17 = smov 128   ;;  %s216_s18 = smov 8  }
 0x1cd   :  { %166 = dma.vmem_to_hbm [thread:$0]  %s161_s16, 256, %s330_s5, [#allocation3], %s215_s17, %s215_s17, %s216_s18  }
 0x1ce   :  { %210 = dma.done.wait [#allocation3], 256  }
 0x1cf   :  { %211 = vsyncadd [#allocation3], 4294967040 }
 0x1d0   :  { %178 = vsyncpa [#allocation3], 1 }

</bundles_post_ra>
